<compile_context>
chip_gen: v7x
topology: tpu7x:2x2x1
jax: 0.10.0
libtpu: 0.0.40
codegen_flags: <defaults>
</compile_context>

<pallas_src>
import numpy as np
import jax
import jax.numpy as jnp
from jax import lax
from jax.experimental import pallas as pl
from jax.experimental.pallas import tpu as pltpu


_VMEM_LIMIT = 48 * 1024 * 1024


# ----------------------- small helpers -----------------------

def _round_up(x, m):
    return (x + m - 1) // m * m


def _row_tile(M, tm):
    # Largest row tile <= tm (multiple of 8), shrink for small problems.
    return tm if M >= tm else _round_up(M, 8)


def _pad_rows(a, tile):
    M = a.shape[0]
    Mp = _round_up(M, tile)
    if Mp != M:
        a = jnp.pad(a, ((0, Mp - M), (0, 0)))
    return a


# ----------------------- Pallas kernels -----------------------

def _down_matmul_relu_kernel(a_ref, w_ref, b_ref, o_ref):
    # Conv2d-as-matmul; the following up-path ReLU is fused into the epilogue.
    acc = jnp.dot(a_ref[...], w_ref[...], preferred_element_type=jnp.float32)
    o_ref[...] = jnp.maximum(acc + b_ref[...], 0.0)


def _up_matmul_stats_kernel(p_ref, w_ref, b_ref, m_ref, e_ref,
                            z_ref, s_ref, q_ref):
    # Sub-pixel ConvTranspose matmul + fused (masked) BatchNorm statistics.
    @pl.when(pl.program_id(0) == 0)
    def _():
        s_ref[...] = jnp.zeros_like(s_ref)
        q_ref[...] = jnp.zeros_like(q_ref)

    z = jnp.dot(p_ref[...], w_ref[...], preferred_element_type=jnp.float32) + b_ref[...]
    z_ref[...] = z

    # (tm, 4) per-row phase-validity bits expanded to (tm, 4*outer) lanes via a
    # tiny matmul with a constant 0/1 phase->lane expansion matrix: keeps
    # boundary / padded windows out of the BN statistics without any in-kernel
    # integer div/mod or lane reshuffles.
    mask = jnp.dot(m_ref[...], e_ref[...], preferred_element_type=jnp.float32)
    zm = z * mask
    s_ref[...] += jnp.sum(zm, axis=0, keepdims=True)
    q_ref[...] += jnp.sum(zm * z, axis=0, keepdims=True)


def _affine_kernel(x_ref, scale_ref, shift_ref, o_ref):
    # Single FMA: BatchNorm folded to per-lane scale/shift (phase-tiled).
    o_ref[...] = x_ref[...] * scale_ref[...] + shift_ref[...]


# ----------------------- pallas_call wrappers -----------------------

def conv_down_relu(patches, w, bias, *, tm=512):
    """ReLU(patches @ w + bias), row-tiled. patches/w are bf16, accum f32."""
    M, K = patches.shape
    C = w.shape[1]
    tme = _row_tile(M, tm)
    patches_p = _pad_rows(patches, tme)
    Mp = patches_p.shape[0]
    ce = pl.CostEstimate(flops=2 * Mp * K * C, transcendentals=0,
                         bytes_accessed=Mp * K * 2 + K * C * 2 + Mp * C * 4)
    out = pl.pallas_call(
        _down_matmul_relu_kernel,
        out_shape=jax.ShapeDtypeStruct((Mp, C), jnp.float32),
        grid_spec=pltpu.PrefetchScalarGridSpec(
            num_scalar_prefetch=0,
            grid=(Mp // tme,),
            in_specs=[pl.BlockSpec((tme, K), lambda i: (i, 0)),
                      pl.BlockSpec((K, C), lambda i: (0, 0)),
                      pl.BlockSpec((1, C), lambda i: (0, 0))],
            out_specs=pl.BlockSpec((tme, C), lambda i: (i, 0)),
        ),
        compiler_params=pltpu.CompilerParams(
            dimension_semantics=("parallel",),
            vmem_limit_bytes=_VMEM_LIMIT),
        cost_estimate=ce,
    )(patches_p, w, bias)
    return out[:M]
    # TODO(synk): for very large K (deep UNet levels, K=16*Cin of several
    # thousand) add a K grid axis + VMEM accumulator so the resident weight
    # block stays within v7x's 64 MiB VMEM.


def conv_up_with_stats(patches, w, bias4, rowmask, expand, *, tm=512):
    """z = patches @ w + bias4, plus masked per-column sum / sumsq accumulators."""
    M, K = patches.shape
    C4 = w.shape[1]
    tme = _row_tile(M, tm)
    patches_p = _pad_rows(patches, tme)
    rowmask_p = _pad_rows(rowmask, tme)   # padded rows -> all-zero mask
    Mp = patches_p.shape[0]
    ce = pl.CostEstimate(flops=2 * Mp * K * C4, transcendentals=0,
                         bytes_accessed=Mp * K * 2 + K * C4 * 2 + Mp * C4 * 4)
    z, s, q = pl.pallas_call(
        _up_matmul_stats_kernel,
        out_shape=(jax.ShapeDtypeStruct((Mp, C4), jnp.float32),
                   jax.ShapeDtypeStruct((1, C4), jnp.float32),
                   jax.ShapeDtypeStruct((1, C4), jnp.float32)),
        grid_spec=pltpu.PrefetchScalarGridSpec(
            num_scalar_prefetch=0,
            grid=(Mp // tme,),
            in_specs=[pl.BlockSpec((tme, K), lambda i: (i, 0)),
                      pl.BlockSpec((K, C4), lambda i: (0, 0)),
                      pl.BlockSpec((1, C4), lambda i: (0, 0)),
                      pl.BlockSpec((tme, 4), lambda i: (i, 0)),
                      pl.BlockSpec((4, C4), lambda i: (0, 0))],
            out_specs=(pl.BlockSpec((tme, C4), lambda i: (i, 0)),
                       pl.BlockSpec((1, C4), lambda i: (0, 0)),
                       pl.BlockSpec((1, C4), lambda i: (0, 0))),
        ),
        compiler_params=pltpu.CompilerParams(
            dimension_semantics=("arbitrary",),   # stats accumulators revisit their block
            vmem_limit_bytes=_VMEM_LIMIT),
        cost_estimate=ce,
    )(patches_p, w, bias4, rowmask_p, expand)
    return z[:M], s, q


def affine(x, scale, shift, *, tm=512):
    """Per-lane scale*x + shift over row tiles (fused BN-apply on phase-major z)."""
    M, C = x.shape
    tme = _row_tile(M, tm)
    xp = _pad_rows(x, tme)
    Mp = xp.shape[0]
    out = pl.pallas_call(
        _affine_kernel,
        out_shape=jax.ShapeDtypeStruct((Mp, C), jnp.float32),
        grid_spec=pltpu.PrefetchScalarGridSpec(
            num_scalar_prefetch=0,
            grid=(Mp // tme,),
            in_specs=[pl.BlockSpec((tme, C), lambda i: (i, 0)),
                      pl.BlockSpec((1, C), lambda i: (0, 0)),
                      pl.BlockSpec((1, C), lambda i: (0, 0))],
            out_specs=pl.BlockSpec((tme, C), lambda i: (i, 0)),
        ),
        compiler_params=pltpu.CompilerParams(
            dimension_semantics=("parallel",),
            vmem_limit_bytes=_VMEM_LIMIT),
    )(xp, scale, shift)
    return out[:M]


# ----------------------- JAX glue (layout / im2col / weight prep) -----------------------

def im2col(x_nhwc, k, stride, pad):
    x = jnp.pad(x_nhwc, ((0, 0), (pad, pad), (pad, pad), (0, 0)))
    N, Hp, Wp, C = x.shape
    Ho = (Hp - k) // stride + 1
    Wo = (Wp - k) // stride + 1
    cols = []
    for kh in range(k):
        for kw in range(k):
            cols.append(x[:, kh:kh + stride * Ho:stride, kw:kw + stride * Wo:stride, :])
    patches = jnp.stack(cols, axis=3)                 # (N, Ho, Wo, k*k, C)
    return patches.reshape(N * Ho * Wo, k * k * C), (Ho, Wo)


def _build_up_weight(w_up):
    # w_up: (inner, outer, 4, 4), PyTorch ConvTranspose2d layout (in, out, kH, kW).
    # Sub-pixel decomposition: the phase-(sh, sw) output at (2a-1+sh, 2b-1+sw)
    # is produced from the 2x2 window y[a-1:a+1, b-1:b+1] using kernel taps
    # kH = 2 + sh - 2*kh', kW = 2 + sw - 2*kw'.
    inner, outer = w_up.shape[0], w_up.shape[1]
    wa = jnp.stack([w_up[:, :, 2:4, :], w_up[:, :, 0:2, :]], axis=2)  # (ci,co,kh',sh,kW)
    wb = jnp.stack([wa[..., 2:4], wa[..., 0:2]], axis=4)              # (ci,co,kh',sh,kw',sw)
    # rows ordered (kh', kw', ci) to match im2col; cols ordered (sh, sw, co)
    return jnp.transpose(wb, (2, 4, 0, 3, 5, 1)).reshape(4 * inner, 4 * outer)


def _build_phase_row_mask(N, Ho, Wo):
    # Per 2x2-window row: which of the 4 subpixel phases land inside the valid
    # output (phase sh=0 -> row 2a-1 needs a>=1; sh=1 -> row 2a needs a<Ho; same
    # for columns).  Phase order (sh, sw) matches the weight column blocks.
    win = (Ho + 1) * (Wo + 1)
    idx = jnp.arange(N * win, dtype=jnp.int32) % win
    a = idx // (Wo + 1)
    b = idx % (Wo + 1)
    vh0, vh1 = a >= 1, a < Ho
    vw0, vw1 = b >= 1, b < Wo
    m = jnp.stack([vh0 & vw0, vh0 & vw1, vh1 & vw0, vh1 & vw1], axis=1)
    return m.astype(jnp.float32)                      # (N*win, 4)


def unet_innermost_forward(x_nchw, params):
    N, Cin, H, W = x_nchw.shape
    x_nhwc = jnp.transpose(x_nchw, (0, 2, 3, 1))

    # ---- down: LeakyReLU(0.2) (applied once, before the 4x im2col expansion),
    #      Conv2d(Cin, inner, 4, s=2, p=1) as an MXU matmul, ReLU fused in.
    w1, b1 = params["w_down"], params["b_down"]
    inner = w1.shape[0]
    x_act = jnp.where(x_nhwc >= 0, x_nhwc, 0.2 * x_nhwc).astype(jnp.bfloat16)
    patches1, (Ho, Wo) = im2col(x_act, 4, 2, 1)
    w1m = jnp.transpose(w1, (2, 3, 1, 0)).reshape(16 * Cin, inner).astype(jnp.bfloat16)
    y1 = conv_down_relu(patches1, w1m, b1.reshape(1, -1))      # (N*Ho*Wo, inner) f32
    y1 = y1.reshape(N, Ho, Wo, inner).astype(jnp.bfloat16)

    # ---- up: ConvTranspose2d(inner, outer, 4, s=2, p=1) via sub-pixel matmul
    #      (2x2 windows x (4*inner, 4*outer) weight), BN stats fused.
    w2t, b2 = params["w_up"], params["b_up"]
    outer = w2t.shape[1]
    patches2, _ = im2col(y1, 2, 1, 1)                 # (N*(Ho+1)*(Wo+1), 4*inner)
    w2m = _build_up_weight(w2t).astype(jnp.bfloat16)  # (4*inner, 4*outer)
    bias4 = jnp.tile(b2, 4).reshape(1, -1)            # phase-major, channel-minor
    rowmask = _build_phase_row_mask(N, Ho, Wo)
    expand = jnp.repeat(jnp.eye(4, dtype=jnp.float32), outer, axis=1)  # (4, 4*outer)
    z, s, q = conv_up_with_stats(patches2, w2m, bias4, rowmask, expand)

    # ---- BatchNorm2d(outer), training-mode batch stats (biased variance),
    #      folded into one per-channel scale/shift, tiled per sub-pixel phase.
    count = N * (2 * Ho) * (2 * Wo)
    s_c = s.reshape(4, outer).sum(axis=0)
    q_c = q.reshape(4, outer).sum(axis=0)
    mean = s_c / count
    var = q_c / count - mean * mean
    inv = lax.rsqrt(var + 1e-5)
    scale_bn = params["gamma"] * inv
    shift_bn = params["beta"] - mean * scale_bn
    scale4 = jnp.tile(scale_bn, 4).reshape(1, -1)     # matches (sh, sw, co) columns
    shift4 = jnp.tile(shift_bn, 4).reshape(1, -1)

    # ---- BN apply on the phase-major z (Pallas FMA pass, lane-dense 4*outer).
    #      Invalid boundary phases get scaled too but are cropped right below.
    z_bn = affine(z, scale4, shift4)                  # (N*(Ho+1)*(Wo+1), 4*outer)

    # ---- pixel shuffle + crop + NCHW + concat with the untouched skip input.
    #      The skip tensor is already NCHW, so the concat needs no extra NHWC
    #      materialization; shuffle/crop/transpose fuse into the concat operand.
    z_bn = z_bn.reshape(N, Ho + 1, Wo + 1, 2, 2, outer)
    z_bn = jnp.transpose(z_bn, (0, 1, 3, 2, 4, 5)).reshape(N, 2 * Ho + 2, 2 * Wo + 2, outer)
    x_latter = z_bn[:, 1:2 * Ho + 1, 1:2 * Wo + 1, :]          # (N, H, W, outer)
    out = jnp.concatenate([jnp.transpose(x_latter, (0, 3, 1, 2)), x_nchw], axis=1)
    # TODO(synk): the F.upsample(bilinear) branch is unreachable for this block
    # (k=4, s=2, p=1 down+up preserves even H, W), so it is not implemented.
    return out                                         # (N, outer+Cin, H, W)


# ----------------------- pure-JAX reference (for verification) -----------------------

def reference_forward(x, params):
    # Convs use bf16 inputs with f32 accumulation to mirror the MXU-native path
    # used by the Pallas kernels.
    w1, b1 = params["w_down"], params["b_down"]
    w2t, b2 = params["w_up"], params["b_up"]
    gamma, beta = params["gamma"], params["beta"]
    h = jnp.where(x >= 0, x, 0.2 * x)
    h = lax.conv_general_dilated(
        h.astype(jnp.bfloat16), w1.astype(jnp.bfloat16), (2, 2), ((1, 1), (1, 1)),
        dimension_numbers=("NCHW", "OIHW", "NCHW"),
        preferred_element_type=jnp.float32)
    h = h + b1.reshape(1, -1, 1, 1)
    h = jnp.maximum(h, 0.0)
    w2_conv = jnp.transpose(w2t[:, :, ::-1, ::-1], (1, 0, 2, 3))
    h = lax.conv_general_dilated(
        h.astype(jnp.bfloat16), w2_conv.astype(jnp.bfloat16), (1, 1), ((2, 2), (2, 2)),
        lhs_dilation=(2, 2),
        dimension_numbers=("NCHW", "OIHW", "NCHW"),
        preferred_element_type=jnp.float32)
    h = h + b2.reshape(1, -1, 1, 1)
    mean = jnp.mean(h, axis=(0, 2, 3), keepdims=True)
    var = jnp.mean((h - mean) ** 2, axis=(0, 2, 3), keepdims=True)
    h = (h - mean) / jnp.sqrt(var + 1e-5) * gamma.reshape(1, -1, 1, 1) \
        + beta.reshape(1, -1, 1, 1)
    return jnp.concatenate([h, x], axis=1)


if __name__ == "__main__":
    key = jax.random.PRNGKey(0)
    N, input_nc, H, W = 2, 4, 16, 16
    inner_nc, outer_nc = 8, 4
    ks = jax.random.split(key, 7)
    params = {
        "w_down": 0.1 * jax.random.normal(ks[0], (inner_nc, input_nc, 4, 4), jnp.float32),
        "b_down": 0.1 * jax.random.normal(ks[1], (inner_nc,), jnp.float32),
        "w_up":   0.1 * jax.random.normal(ks[2], (inner_nc, outer_nc, 4, 4), jnp.float32),
        "b_up":   0.1 * jax.random.normal(ks[3], (outer_nc,), jnp.float32),
        "gamma":  1.0 + 0.1 * jax.random.normal(ks[4], (outer_nc,), jnp.float32),
        "beta":   0.1 * jax.random.normal(ks[5], (outer_nc,), jnp.float32),
    }
    x = jax.random.normal(ks[6], (N, input_nc, H, W), jnp.float32)

    fwd = jax.jit(unet_innermost_forward)
    out = jax.block_until_ready(fwd(x, params))
    ref = jax.block_until_ready(reference_forward(x, params))

    assert out.shape == (N, outer_nc + input_nc, H, W), out.shape
    # bf16-product / f32-accumulation on both paths -> differences are only
    # from accumulation order; 2e-3 is comfortable headroom.
    np.testing.assert_allclose(np.asarray(out), np.asarray(ref), rtol=2e-3, atol=2e-3)
    print("KERNEL_OK")
</pallas_src>

<mosaic_0001>
module attributes {stable_mosaic.version = 11 : i64} {
  func.func @_down_matmul_relu_kernel(%arg0: i32, %arg1: memref<128x64xbf16, #tpu.memory_space<vmem>>, %arg2: memref<64x8xbf16, #tpu.memory_space<vmem>>, %arg3: memref<1x8xf32, #tpu.memory_space<vmem>>, %arg4: memref<128x8xf32, #tpu.memory_space<vmem>>) attributes {dimension_semantics = [#tpu.dimension_semantics<parallel>], iteration_bounds = array<i64: 1>, scalar_prefetch = 0 : i64, scratch_operands = 0 : i64, tpu.core_type = #tpu.core_type<tc>, window_params = [{transform_indices = @transform_0, window_bounds = array<i64: 128, 64>}, {pipeline_mode = #tpu.pipeline_mode<synchronous>, transform_indices = @transform_1, window_bounds = array<i64: 64, 8>}, {pipeline_mode = #tpu.pipeline_mode<synchronous>, transform_indices = @transform_2, window_bounds = array<i64: 1, 8>}, {transform_indices = @transform_3, window_bounds = array<i64: 128, 8>}]} {
    %c0 = arith.constant 0 : index
    %c0_0 = arith.constant 0 : index
    %0 = vector.load %arg1[%c0, %c0_0] : memref<128x64xbf16, #tpu.memory_space<vmem>>, vector<128x64xbf16>
    %c0_1 = arith.constant 0 : index
    %c0_2 = arith.constant 0 : index
    %1 = vector.load %arg2[%c0_1, %c0_2] : memref<64x8xbf16, #tpu.memory_space<vmem>>, vector<64x8xbf16>
    %cst = arith.constant dense<0.000000e+00> : vector<128x8xf32>
    %2 = tpu.matmul %0, %1, %cst {dimension_numbers = #tpu.dot_dimension_numbers<[1], [0], [0], [1], [0, 0, 1, 1], [], []>} : vector<128x64xbf16>, vector<64x8xbf16>, vector<128x8xf32> -> vector<128x8xf32>
    %c0_3 = arith.constant 0 : index
    %c0_4 = arith.constant 0 : index
    %3 = vector.load %arg3[%c0_3, %c0_4] : memref<1x8xf32, #tpu.memory_space<vmem>>, vector<1x8xf32>
    %4 = vector.broadcast %3 : vector<1x8xf32> to vector<128x8xf32>
    %5 = arith.addf %2, %4 : vector<128x8xf32>
    %cst_5 = arith.constant 0.000000e+00 : f32
    %6 = vector.broadcast %cst_5 : f32 to vector<128x8xf32>
    %7 = arith.maximumf %5, %6 : vector<128x8xf32>
    %c0_6 = arith.constant 0 : index
    %c0_7 = arith.constant 0 : index
    %8 = vector.load %arg4[%c0_6, %c0_7] : memref<128x8xf32, #tpu.memory_space<vmem>>, vector<128x8xf32>
    tpu.vector_store %arg4[%c0_6, %c0_7], %7 {strides = array<i32>} : memref<128x8xf32, #tpu.memory_space<vmem>>, vector<128x8xf32>,
    return
  }
  func.func @transform_0(%arg0: i32) -> (i32, i32) {
    %c0_i32 = arith.constant 0 : i32
    %c0_i32_0 = arith.constant 0 : i32
    return %arg0, %c0_i32 : i32, i32
  }
  func.func @transform_1(%arg0: i32) -> (i32, i32) {
    %c0_i32 = arith.constant 0 : i32
    %c0_i32_0 = arith.constant 0 : i32
    %c0_i32_1 = arith.constant 0 : i32
    return %c0_i32, %c0_i32_0 : i32, i32
  }
  func.func @transform_2(%arg0: i32) -> (i32, i32) {
    %c0_i32 = arith.constant 0 : i32
    %c0_i32_0 = arith.constant 0 : i32
    %c0_i32_1 = arith.constant 0 : i32
    return %c0_i32, %c0_i32_0 : i32, i32
  }
  func.func @transform_3(%arg0: i32) -> (i32, i32) {
    %c0_i32 = arith.constant 0 : i32
    %c0_i32_0 = arith.constant 0 : i32
    return %arg0, %c0_i32 : i32, i32
  }
}

module attributes {stable_mosaic.version = 11 : i64} {
  func.func @_affine_kernel(%arg0: i32, %arg1: memref<168x16xf32, #tpu.memory_space<vmem>>, %arg2: memref<1x16xf32, #tpu.memory_space<vmem>>, %arg3: memref<1x16xf32, #tpu.memory_space<vmem>>, %arg4: memref<168x16xf32, #tpu.memory_space<vmem>>) attributes {dimension_semantics = [#tpu.dimension_semantics<parallel>], iteration_bounds = array<i64: 1>, scalar_prefetch = 0 : i64, scratch_operands = 0 : i64, tpu.core_type = #tpu.core_type<tc>, window_params = [{transform_indices = @transform_0, window_bounds = array<i64: 168, 16>}, {pipeline_mode = #tpu.pipeline_mode<synchronous>, transform_indices = @transform_1, window_bounds = array<i64: 1, 16>}, {pipeline_mode = #tpu.pipeline_mode<synchronous>, transform_indices = @transform_2, window_bounds = array<i64: 1, 16>}, {transform_indices = @transform_3, window_bounds = array<i64: 168, 16>}]} {
    %c0 = arith.constant 0 : index
    %c0_0 = arith.constant 0 : index
    %0 = vector.load %arg1[%c0, %c0_0] : memref<168x16xf32, #tpu.memory_space<vmem>>, vector<168x16xf32>
    %c0_1 = arith.constant 0 : index
    %c0_2 = arith.constant 0 : index
    %1 = vector.load %arg2[%c0_1, %c0_2] : memref<1x16xf32, #tpu.memory_space<vmem>>, vector<1x16xf32>
    %2 = vector.broadcast %1 : vector<1x16xf32> to vector<168x16xf32>
    %3 = arith.mulf %0, %2 : vector<168x16xf32>
    %c0_3 = arith.constant 0 : index
    %c0_4 = arith.constant 0 : index
    %4 = vector.load %arg3[%c0_3, %c0_4] : memref<1x16xf32, #tpu.memory_space<vmem>>, vector<1x16xf32>
    %5 = vector.broadcast %4 : vector<1x16xf32> to vector<168x16xf32>
    %6 = arith.addf %3, %5 : vector<168x16xf32>
    %c0_5 = arith.constant 0 : index
    %c0_6 = arith.constant 0 : index
    %7 = vector.load %arg4[%c0_5, %c0_6] : memref<168x16xf32, #tpu.memory_space<vmem>>, vector<168x16xf32>
    tpu.vector_store %arg4[%c0_5, %c0_6], %6 {strides = array<i32>} : memref<168x16xf32, #tpu.memory_space<vmem>>, vector<168x16xf32>,
    return
  }
  func.func @transform_0(%arg0: i32) -> (i32, i32) {
    %c0_i32 = arith.constant 0 : i32
    %c0_i32_0 = arith.constant 0 : i32
    return %arg0, %c0_i32 : i32, i32
  }
  func.func @transform_1(%arg0: i32) -> (i32, i32) {
    %c0_i32 = arith.constant 0 : i32
    %c0_i32_0 = arith.constant 0 : i32
    %c0_i32_1 = arith.constant 0 : i32
    return %c0_i32, %c0_i32_0 : i32, i32
  }
  func.func @transform_2(%arg0: i32) -> (i32, i32) {
    %c0_i32 = arith.constant 0 : i32
    %c0_i32_0 = arith.constant 0 : i32
    %c0_i32_1 = arith.constant 0 : i32
    return %c0_i32, %c0_i32_0 : i32, i32
  }
  func.func @transform_3(%arg0: i32) -> (i32, i32) {
    %c0_i32 = arith.constant 0 : i32
    %c0_i32_0 = arith.constant 0 : i32
    return %arg0, %c0_i32 : i32, i32
  }
}

module attributes {stable_mosaic.version = 11 : i64} {
  func.func @_up_matmul_stats_kernel(%arg0: i32, %arg1: memref<168x32xbf16, #tpu.memory_space<vmem>>, %arg2: memref<32x16xbf16, #tpu.memory_space<vmem>>, %arg3: memref<1x16xf32, #tpu.memory_space<vmem>>, %arg4: memref<168x4xf32, #tpu.memory_space<vmem>>, %arg5: memref<4x16xf32, #tpu.memory_space<vmem>>, %arg6: memref<168x16xf32, #tpu.memory_space<vmem>>, %arg7: memref<1x16xf32, #tpu.memory_space<vmem>>, %arg8: memref<1x16xf32, #tpu.memory_space<vmem>>) attributes {dimension_semantics = [#tpu.dimension_semantics<arbitrary>], iteration_bounds = array<i64: 1>, scalar_prefetch = 0 : i64, scratch_operands = 0 : i64, tpu.core_type = #tpu.core_type<tc>, window_params = [{transform_indices = @transform_0, window_bounds = array<i64: 168, 32>}, {pipeline_mode = #tpu.pipeline_mode<synchronous>, transform_indices = @transform_1, window_bounds = array<i64: 32, 16>}, {pipeline_mode = #tpu.pipeline_mode<synchronous>, transform_indices = @transform_2, window_bounds = array<i64: 1, 16>}, {transform_indices = @transform_3, window_bounds = array<i64: 168, 4>}, {pipeline_mode = #tpu.pipeline_mode<synchronous>, transform_indices = @transform_4, window_bounds = array<i64: 4, 16>}, {transform_indices = @transform_5, window_bounds = array<i64: 168, 16>}, {pipeline_mode = #tpu.pipeline_mode<synchronous>, transform_indices = @transform_6, window_bounds = array<i64: 1, 16>}, {pipeline_mode = #tpu.pipeline_mode<synchronous>, transform_indices = @transform_7, window_bounds = array<i64: 1, 16>}]} {
    %c0_i32 = arith.constant 0 : i32
    %0 = arith.cmpi eq, %arg0, %c0_i32 : i32
    %1 = arith.extui %0 : i1 to i32
    %c0_i32_0 = arith.constant 0 : i32
    %2 = arith.cmpi ne, %1, %c0_i32_0 : i32
    scf.if %2 {
      %cst_23 = arith.constant 0.000000e+00 : f32
      %25 = vector.broadcast %cst_23 : f32 to vector<1x16xf32>
      %c0_24 = arith.constant 0 : index
      %c0_25 = arith.constant 0 : index
      %26 = vector.load %arg7[%c0_24, %c0_25] : memref<1x16xf32, #tpu.memory_space<vmem>>, vector<1x16xf32>
      tpu.vector_store %arg7[%c0_24, %c0_25], %25 {strides = array<i32>} : memref<1x16xf32, #tpu.memory_space<vmem>>, vector<1x16xf32>,
      %cst_26 = arith.constant 0.000000e+00 : f32
      %27 = vector.broadcast %cst_26 : f32 to vector<1x16xf32>
      %c0_27 = arith.constant 0 : index
      %c0_28 = arith.constant 0 : index
      %28 = vector.load %arg8[%c0_27, %c0_28] : memref<1x16xf32, #tpu.memory_space<vmem>>, vector<1x16xf32>
      tpu.vector_store %arg8[%c0_27, %c0_28], %27 {strides = array<i32>} : memref<1x16xf32, #tpu.memory_space<vmem>>, vector<1x16xf32>,
    } else {
    }
    %c0 = arith.constant 0 : index
    %c0_1 = arith.constant 0 : index
    %3 = vector.load %arg1[%c0, %c0_1] : memref<168x32xbf16, #tpu.memory_space<vmem>>, vector<168x32xbf16>
    %c0_2 = arith.constant 0 : index
    %c0_3 = arith.constant 0 : index
    %4 = vector.load %arg2[%c0_2, %c0_3] : memref<32x16xbf16, #tpu.memory_space<vmem>>, vector<32x16xbf16>
    %cst = arith.constant dense<0.000000e+00> : vector<168x16xf32>
    %5 = tpu.matmul %3, %4, %cst {dimension_numbers = #tpu.dot_dimension_numbers<[1], [0], [0], [1], [0, 0, 1, 1], [], []>} : vector<168x32xbf16>, vector<32x16xbf16>, vector<168x16xf32> -> vector<168x16xf32>
    %c0_4 = arith.constant 0 : index
    %c0_5 = arith.constant 0 : index
    %6 = vector.load %arg3[%c0_4, %c0_5] : memref<1x16xf32, #tpu.memory_space<vmem>>, vector<1x16xf32>
    %7 = vector.broadcast %6 : vector<1x16xf32> to vector<168x16xf32>
    %8 = arith.addf %5, %7 : vector<168x16xf32>
    %c0_6 = arith.constant 0 : index
    %c0_7 = arith.constant 0 : index
    %9 = vector.load %arg6[%c0_6, %c0_7] : memref<168x16xf32, #tpu.memory_space<vmem>>, vector<168x16xf32>
    tpu.vector_store %arg6[%c0_6, %c0_7], %8 {strides = array<i32>} : memref<168x16xf32, #tpu.memory_space<vmem>>, vector<168x16xf32>,
    %c0_8 = arith.constant 0 : index
    %c0_9 = arith.constant 0 : index
    %10 = vector.load %arg4[%c0_8, %c0_9] : memref<168x4xf32, #tpu.memory_space<vmem>>, vector<168x4xf32>
    %c0_10 = arith.constant 0 : index
    %c0_11 = arith.constant 0 : index
    %11 = vector.load %arg5[%c0_10, %c0_11] : memref<4x16xf32, #tpu.memory_space<vmem>>, vector<4x16xf32>
    %cst_12 = arith.constant dense<0.000000e+00> : vector<168x16xf32>
    %12 = tpu.matmul %10, %11, %cst_12 {dimension_numbers = #tpu.dot_dimension_numbers<[1], [0], [0], [1], [0, 0, 1, 1], [], []>} : vector<168x4xf32>, vector<4x16xf32>, vector<168x16xf32> -> vector<168x16xf32>
    %13 = arith.mulf %8, %12 : vector<168x16xf32>
    %c0_13 = arith.constant 0 : index
    %c0_14 = arith.constant 0 : index
    %14 = vector.load %arg7[%c0_13, %c0_14] : memref<1x16xf32, #tpu.memory_space<vmem>>, vector<1x16xf32>
    %cst_15 = arith.constant dense<0.000000e+00> : vector<16xf32>
    %15 = vector.multi_reduction <add>, %13, %cst_15 [0] : vector<168x16xf32> to vector<16xf32>
    %16 = vector.shape_cast %15 : vector<16xf32> to vector<1x16xf32>
    %17 = arith.addf %14, %16 : vector<1x16xf32>
    %c0_16 = arith.constant 0 : index
    %c0_17 = arith.constant 0 : index
    %18 = vector.load %arg7[%c0_16, %c0_17] : memref<1x16xf32, #tpu.memory_space<vmem>>, vector<1x16xf32>
    tpu.vector_store %arg7[%c0_16, %c0_17], %17 {strides = array<i32>} : memref<1x16xf32, #tpu.memory_space<vmem>>, vector<1x16xf32>,
    %c0_18 = arith.constant 0 : index
    %c0_19 = arith.constant 0 : index
    %19 = vector.load %arg8[%c0_18, %c0_19] : memref<1x16xf32, #tpu.memory_space<vmem>>, vector<1x16xf32>
    %20 = arith.mulf %13, %8 : vector<168x16xf32>
    %cst_20 = arith.constant dense<0.000000e+00> : vector<16xf32>
    %21 = vector.multi_reduction <add>, %20, %cst_20 [0] : vector<168x16xf32> to vector<16xf32>
    %22 = vector.shape_cast %21 : vector<16xf32> to vector<1x16xf32>
    %23 = arith.addf %19, %22 : vector<1x16xf32>
    %c0_21 = arith.constant 0 : index
    %c0_22 = arith.constant 0 : index
    %24 = vector.load %arg8[%c0_21, %c0_22] : memref<1x16xf32, #tpu.memory_space<vmem>>, vector<1x16xf32>
    tpu.vector_store %arg8[%c0_21, %c0_22], %23 {strides = array<i32>} : memref<1x16xf32, #tpu.memory_space<vmem>>, vector<1x16xf32>,
    return
  }
  func.func @transform_0(%arg0: i32) -> (i32, i32) {
    %c0_i32 = arith.constant 0 : i32
    %c0_i32_0 = arith.constant 0 : i32
    return %arg0, %c0_i32 : i32, i32
  }
  func.func @transform_1(%arg0: i32) -> (i32, i32) {
    %c0_i32 = arith.constant 0 : i32
    %c0_i32_0 = arith.constant 0 : i32
    %c0_i32_1 = arith.constant 0 : i32
    return %c0_i32, %c0_i32_0 : i32, i32
  }
  func.func @transform_2(%arg0: i32) -> (i32, i32) {
    %c0_i32 = arith.constant 0 : i32
    %c0_i32_0 = arith.constant 0 : i32
    %c0_i32_1 = arith.constant 0 : i32
    return %c0_i32, %c0_i32_0 : i32, i32
  }
  func.func @transform_3(%arg0: i32) -> (i32, i32) {
    %c0_i32 = arith.constant 0 : i32
    %c0_i32_0 = arith.constant 0 : i32
    return %arg0, %c0_i32 : i32, i32
  }
  func.func @transform_4(%arg0: i32) -> (i32, i32) {
    %c0_i32 = arith.constant 0 : i32
    %c0_i32_0 = arith.constant 0 : i32
    %c0_i32_1 = arith.constant 0 : i32
    return %c0_i32, %c0_i32_0 : i32, i32
  }
  func.func @transform_5(%arg0: i32) -> (i32, i32) {
    %c0_i32 = arith.constant 0 : i32
    %c0_i32_0 = arith.constant 0 : i32
    return %arg0, %c0_i32 : i32, i32
  }
  func.func @transform_6(%arg0: i32) -> (i32, i32) {
    %c0_i32 = arith.constant 0 : i32
    %c0_i32_0 = arith.constant 0 : i32
    %c0_i32_1 = arith.constant 0 : i32
    return %c0_i32, %c0_i32_0 : i32, i32
  }
  func.func @transform_7(%arg0: i32) -> (i32, i32) {
    %c0_i32 = arith.constant 0 : i32
    %c0_i32_0 = arith.constant 0 : i32
    %c0_i32_1 = arith.constant 0 : i32
    return %c0_i32, %c0_i32_0 : i32, i32
  }
}

</mosaic_0001>

<bundles_post_ra>
// kernel: unet_innermost_forward.3
= control target key start
LH: loop header
LB: loop body
LE: loop exit
PB: predicated region body
PF: predicated region fallthrough
CT: control target
= control target key end

     0   :  { %vm110_vm0 = vcmask 523264   ;;  %vm248_vm1 = vcmask 64512   ;;  %s477_s1 = inlined_call_operand.vmem [shape: bf16[64,8], index: 1, kind: input, shape index: {}]   ;;  %s478_s0 = inlined_call_operand.vmem [shape: bf16[128,64], index: 0, kind: input, shape index: {}]   ;;  %s479_s2 = inlined_call_operand.vmem [shape: f32[1,8], index: 2, kind: input, shape index: {}]   ;;  %s480_s3 = inlined_call_operand.vmem [shape: f32[128,8], index: 3, kind: output, shape index: {}]  }
   0x1   :  { %v334_v0 = vld [vmem:[%s477_s1] sm:$0xff]   ;;  %v335_v1 = vld [vmem:[%s477_s1 + $0x8] sm:$0xff]   ;;  %v336_v2 = vld [vmem:[%s477_s1 + $0x10] sm:$0xff]  }
   0x2   :  { %302 = vmatprep.subr.bf16.mxu0 %v334_v0  ;;  %326 = vmatprep.subr.bf16.mxu1 %v334_v0  ;;  %v338_v3 = vld [vmem:[%s478_s0] sm:$0xff]   ;;  %v337_v5 = vld [vmem:[%s477_s1 + $0x18] sm:$0xff]   ;;  %v340_v6 = vld [vmem:[%s478_s0 + $0x8] sm:$0xff]  }
   0x3   :  { %303 = vmatpush3.bf16.msra.mxu0 %v334_v0  ;;  %330 = vmatpush3.bf16.msra.mxu1 %v334_v0  ;;  %v339_v4 = vld [vmem:[%s478_s0 + $0x20] sm:$0xff]   ;;  %v341_v7 = vld [vmem:[%s478_s0 + $0x28] sm:$0xff]   ;;  %v342_v8 = vld [vmem:[%s478_s0 + $0x10] sm:$0xff]  }
   0x4   :  { %304 = vmatprep.subr.bf16.mxu0 %v335_v1  ;;  %327 = vmatprep.subr.bf16.mxu1 %v335_v1  ;;  %v343_v9 = vld [vmem:[%s478_s0 + $0x30] sm:$0xff]   ;;  %v344_v10 = vld [vmem:[%s478_s0 + $0x18] sm:$0xff]   ;;  %v269_v12 = vld [vmem:[%s479_s2] ss:$0 sm:$0xff] }
   0x5   :  { %310 = vmatprep.mubr.msk.bf16.mxu0 %vm110_vm0, %v338_v3  ;;  %318 = vmatprep.mubr.msk.bf16.mxu1 %vm110_vm0, %v339_v4  ;;  %v345_v11 = vld [vmem:[%s478_s0 + $0x38] sm:$0xff]  }
   0x7   :  { %305 = vmatpush3.bf16.msra.mxu0 %v335_v1  ;;  %331 = vmatpush3.bf16.msra.mxu1 %v335_v1 }
   0x8   :  { %306 = vmatprep.subr.bf16.mxu0 %v336_v2  ;;  %328 = vmatprep.subr.bf16.mxu1 %v336_v2 }
   0xb   :  { %307 = vmatpush3.bf16.msra.mxu0 %v336_v2  ;;  %332 = vmatpush3.bf16.msra.mxu1 %v336_v2 }
   0xc   :  { %308 = vmatprep.subr.bf16.mxu0 %v337_v5  ;;  %329 = vmatprep.subr.bf16.mxu1 %v337_v5 }
   0xf   :  { %309 = vmatpush3.bf16.msra.mxu0 %v337_v5  ;;  %333 = vmatpush3.bf16.msra.mxu1 %v337_v5 }
  0x12   :  { %311 = vmatmul.mubr.msk.bf16.vlgmr.msra.gmra.mrb[0].mxu0 %vm110_vm0, %v340_v6  ;;  %319 = vmatmul.mubr.msk.bf16.vlgmr.msra.gmra.mrb[0].mxu1 %vm110_vm0, %v341_v7 }
  0x13   :  { %314 = vmatprep.mubr.msk.bf16.mxu0 %vm110_vm0, %v342_v8  ;;  %322 = vmatprep.mubr.msk.bf16.mxu1 %vm110_vm0, %v343_v9 }
  0x1a   :  { %315 = vmatmul.mubr.msk.bf16.gmra.mrb[4].mxu0 %vm110_vm0, %v344_v10  ;;  %323 = vmatmul.mubr.msk.bf16.gmra.mrb[4].mxu1 %vm110_vm0, %v345_v11 }
  0xe5   :  { %v312_v13 = vpop.f32.mrb[0].mxu0  ;;  %v320_v14 = vpop.f32.mrb[0].mxu1 }
  0xe6   :  { %v178_v15 = vadd.f32 %v312_v13, %v269_v12  ;;  %v210_v16 = vadd.f32 %v320_v14, %v269_v12  ;;  %v169_v17 = vpop.f32.mrb[1].mxu0  ;;  %v201_v18 = vpop.f32.mrb[1].mxu1 }
  0xe7   :  { %v170_v19 = vadd.f32 %v269_v12, %v169_v17  ;;  %v202_v20 = vadd.f32 %v269_v12, %v201_v18  ;;  %v313_v21 = vpop.f32.mrb[2].mxu0  ;;  %v321_v22 = vpop.f32.mrb[2].mxu1 }
  0xe8   :  { %v234_v23 = vmax.f32 %v178_v15, 0.0  ;;  %v242_v24 = vmax.f32 %v210_v16, 0.0  ;;  %v181_v25 = vadd.f32 %v313_v21, %v269_v12  ;;  %v213_v26 = vadd.f32 %v321_v22, %v269_v12  ;;  %v172_v27 = vpop.f32.mrb[3].mxu0  ;;  %v204_v28 = vpop.f32.mrb[3].mxu1 }
  0xe9   :  { %v232_v29 = vmax.f32 %v170_v19, 0.0  ;;  %v240_v30 = vmax.f32 %v202_v20, 0.0  ;;  %v173_v31 = vadd.f32 %v269_v12, %v172_v27  ;;  %v205_v32 = vadd.f32 %v269_v12, %v204_v28 }
  0xea   :  { %251 = vst.msk [vmem:[%s480_s3 + $0x10] sm:$0xff] %vm248_vm1, %v234_v23  ;;  %259 = vst.msk [vmem:[%s480_s3 + $0x50] sm:$0xff] %vm248_vm1, %v242_v24  ;;  %v235_v33 = vmax.f32 %v181_v25, 0.0  ;;  %v243_v34 = vmax.f32 %v213_v26, 0.0 }
  0xeb   :  { %249 = vst.msk [vmem:[%s480_s3] sm:$0xff] %vm248_vm1, %v232_v29  ;;  %257 = vst.msk [vmem:[%s480_s3 + $0x40] sm:$0xff] %vm248_vm1, %v240_v30  ;;  %v233_v35 = vmax.f32 %v173_v31, 0.0  ;;  %v241_v36 = vmax.f32 %v205_v32, 0.0 }
  0xec   :  { %252 = vst.msk [vmem:[%s480_s3 + $0x18] sm:$0xff] %vm248_vm1, %v235_v33  ;;  %260 = vst.msk [vmem:[%s480_s3 + $0x58] sm:$0xff] %vm248_vm1, %v243_v34 }
  0xed   :  { %250 = vst.msk [vmem:[%s480_s3 + $0x8] sm:$0xff] %vm248_vm1, %v233_v35  ;;  %258 = vst.msk [vmem:[%s480_s3 + $0x48] sm:$0xff] %vm248_vm1, %v241_v36  ;;  %v316_v37 = vpop.f32.mrb[4].mxu0  ;;  %v324_v38 = vpop.f32.mrb[4].mxu1 }
  0xee   :  { %v194_v39 = vadd.f32 %v316_v37, %v269_v12  ;;  %v226_v40 = vadd.f32 %v324_v38, %v269_v12  ;;  %v185_v41 = vpop.f32.mrb[5].mxu0  ;;  %v217_v42 = vpop.f32.mrb[5].mxu1 }
  0xef   :  { %v186_v43 = vadd.f32 %v269_v12, %v185_v41  ;;  %v218_v44 = vadd.f32 %v269_v12, %v217_v42  ;;  %v317_v45 = vpop.f32.mrb[6].mxu0  ;;  %v325_v46 = vpop.f32.mrb[6].mxu1 }
  0xf0   :  { %v238_v47 = vmax.f32 %v194_v39, 0.0  ;;  %v246_v48 = vmax.f32 %v226_v40, 0.0  ;;  %v197_v49 = vadd.f32 %v317_v45, %v269_v12  ;;  %v229_v50 = vadd.f32 %v325_v46, %v269_v12  ;;  %v188_v51 = vpop.f32.mrb[7].mxu0  ;;  %v220_v52 = vpop.f32.mrb[7].mxu1 }
  0xf1   :  { %v236_v53 = vmax.f32 %v186_v43, 0.0  ;;  %v244_v54 = vmax.f32 %v218_v44, 0.0  ;;  %v189_v55 = vadd.f32 %v269_v12, %v188_v51  ;;  %v221_v56 = vadd.f32 %v269_v12, %v220_v52 }
  0xf2   :  { %255 = vst.msk [vmem:[%s480_s3 + $0x30] sm:$0xff] %vm248_vm1, %v238_v47  ;;  %263 = vst.msk [vmem:[%s480_s3 + $0x70] sm:$0xff] %vm248_vm1, %v246_v48  ;;  %v239_v57 = vmax.f32 %v197_v49, 0.0  ;;  %v247_v58 = vmax.f32 %v229_v50, 0.0 }
  0xf3   :  { %253 = vst.msk [vmem:[%s480_s3 + $0x20] sm:$0xff] %vm248_vm1, %v236_v53  ;;  %261 = vst.msk [vmem:[%s480_s3 + $0x60] sm:$0xff] %vm248_vm1, %v244_v54  ;;  %v237_v59 = vmax.f32 %v189_v55, 0.0  ;;  %v245_v60 = vmax.f32 %v221_v56, 0.0 }
  0xf4   :  { %256 = vst.msk [vmem:[%s480_s3 + $0x38] sm:$0xff] %vm248_vm1, %v239_v57  ;;  %264 = vst.msk [vmem:[%s480_s3 + $0x78] sm:$0xff] %vm248_vm1, %v247_v58 }
  0xf5   :  { %254 = vst.msk [vmem:[%s480_s3 + $0x28] sm:$0xff] %vm248_vm1, %v237_v59  ;;  %262 = vst.msk [vmem:[%s480_s3 + $0x68] sm:$0xff] %vm248_vm1, %v245_v60 }

// kernel: tile.18
= control target key start
LH: loop header
LB: loop body
LE: loop exit
PB: predicated region body
PF: predicated region fallthrough
CT: control target
= control target key end

     0   :  { %s22_s0 = inlined_call_operand.vmem [shape: f32[4], index: 0, kind: input, shape index: {}]   ;;  %s23_s1 = inlined_call_operand.vmem [shape: f32[4,4], index: 1, kind: output, shape index: {}]  }
   0x1   :  { %v4_v0 = vld [vmem:[%s22_s0] ss:$0 sm:$0xff] }
   0x2   :  { %5 = vst [vmem:[%s23_s1] sm:$0xf] %v4_v0 }

// kernel: tile.19
= control target key start
LH: loop header
LB: loop body
LE: loop exit
PB: predicated region body
PF: predicated region fallthrough
CT: control target
= control target key end

     0   :  { %vm7_vm0 = vcmask 31744   ;;  %s37_s8 = smov 4   ;;  %s38_s9 = smov 8   ;;  %vm13_vm1 = vcmask 130144   ;;  %vm19_vm2 = vcmask 97344   ;;  %vm25_vm3 = vcmask 64544   ;;  %s55_s0 = inlined_call_operand.vmem [shape: f32[4,4], index: 0, kind: input, shape index: {}]   ;;  %s56_s1 = inlined_call_operand.vmem [shape: f32[1,16], index: 1, kind: output, shape index: {}]  }
   0x1   :  { %v4_v0 = vld [vmem:[%s55_s0] sm:$0xf]  ;;  %s36_s0 = smov 12  }
   0x2   :  { %5 = vst [vmem:[#allocation1] sm:$0xf] %v4_v0 }
   0x9   :  { %v10_v1 = vld [vmem:[#allocation1 + $0x3] sm:$0x1]   ;;  %v22_v2 = vld [vmem:[#allocation1 + $0x1] sm:$0x1]   ;;  %v6_v3 = vld [vmem:[#allocation1] sm:$0x1]  }
   0xa   :  { %11 = vrot.lane.b32.xlu0 %v10_v1, %s36_s0  ;;  %23 = vrot.lane.b32.xlu1 %v22_v2, %s37_s8  ;;  %v16_v4 = vld [vmem:[#allocation1 + $0x2] sm:$0x1]   ;;  %8 = vst.msk [vmem:[#allocation0] sm:$0x1] %vm7_vm0, %v6_v3  }
   0xe   :  { %17 = vrot.lane.b32.xlu0 %v16_v4, %s38_s9 }
  0x7c   :  { %v12_v5 = vpop.permute.xlu0 %11   ;;  %v24_v6 = vpop.permute.xlu1 %23  }
  0x7d   :  { %14 = vst.msk [vmem:[#allocation0] sm:$0x1] %vm13_vm1, %v12_v5  }
  0x80   :  { %v18_v7 = vpop.permute.xlu0 %17  }
  0x81   :  { %20 = vst.msk [vmem:[#allocation0] sm:$0x1] %vm19_vm2, %v18_v7  }
  0x82   :  { %26 = vst.msk [vmem:[#allocation0] sm:$0x1] %vm25_vm3, %v24_v6  }
  0x89   :  { %v30_v8 = vld [vmem:[#allocation0] sm:$0x1] }
  0x8a   :  { %32 = vst [vmem:[%s56_s1] sm:$0x1] %v30_v8 }

// kernel: unet_innermost_forward.5
= control target key start
LH: loop header
LB: loop body
LE: loop exit
PB: predicated region body
PF: predicated region fallthrough
CT: control target
= control target key end

     0   :  { %vm91_vm0 = vcmask 130048   ;;  %s338_s0 = inlined_call_operand.vmem [shape: f32[168,16], index: 0, kind: input, shape index: {}]   ;;  %s339_s1 = inlined_call_operand.vmem [shape: f32[1,16], index: 1, kind: input, shape index: {}]   ;;  %s340_s2 = inlined_call_operand.vmem [shape: f32[1,16], index: 2, kind: input, shape index: {}]   ;;  %s341_s3 = inlined_call_operand.vmem [shape: f32[168,16], index: 3, kind: output, shape index: {}]  }
   0x1   :  { %v14_v0 = vld [vmem:[%s338_s0] sm:$0xff]  ;;  %v15_v4 = vld [vmem:[%s338_s0 + $0x8] sm:$0xff]  ;;  %v16_v5 = vld [vmem:[%s338_s0 + $0x10] sm:$0xff] }
   0x2   :  { %v145_v1 = vld [vmem:[%s339_s1] ss:$0 sm:$0xff]  ;;  %v17_v6 = vld [vmem:[%s338_s0 + $0x18] sm:$0xff]  ;;  %v19_v11 = vld [vmem:[%s338_s0 + $0x28] sm:$0xff] }
   0x3   :  { %v150_v2 = vld [vmem:[%s340_s2] ss:$0 sm:$0xff]  ;;  %v42_v3 = vmul.f32 %v145_v1, %v14_v0  ;;  %v43_v7 = vmul.f32 %v145_v1, %v15_v4  ;;  %v44_v8 = vmul.f32 %v145_v1, %v16_v5  ;;  %v45_v9 = vmul.f32 %v145_v1, %v17_v6  ;;  %v20_v12 = vld [vmem:[%s338_s0 + $0x30] sm:$0xff]  ;;  %v21_v17 = vld [vmem:[%s338_s0 + $0x38] sm:$0xff] }
   0x4   :  { %v18_v10 = vld [vmem:[%s338_s0 + $0x20] sm:$0xff]  ;;  %v47_v15 = vmul.f32 %v145_v1, %v19_v11  ;;  %v48_v16 = vmul.f32 %v145_v1, %v20_v12  ;;  %v23_v19 = vld [vmem:[%s338_s0 + $0x48] sm:$0xff]  ;;  %v49_v23 = vmul.f32 %v145_v1, %v21_v17  ;;  %v24_v24 = vld [vmem:[%s338_s0 + $0x50] sm:$0xff] }
   0x5   :  { %v70_v13 = vadd.f32 %v150_v2, %v42_v3  ;;  %v46_v14 = vmul.f32 %v145_v1, %v18_v10  ;;  %v22_v18 = vld [vmem:[%s338_s0 + $0x40] sm:$0xff]  ;;  %v71_v20 = vadd.f32 %v150_v2, %v43_v7  ;;  %v72_v21 = vadd.f32 %v150_v2, %v44_v8  ;;  %v25_v25 = vld [vmem:[%s338_s0 + $0x58] sm:$0xff]  ;;  %v27_v31 = vld [vmem:[%s338_s0 + $0x68] sm:$0xff] }
   0x6   :  { %v73_v22 = vadd.f32 %v150_v2, %v45_v9  ;;  %v26_v26 = vld [vmem:[%s338_s0 + $0x60] sm:$0xff]  ;;  %v75_v28 = vadd.f32 %v150_v2, %v47_v15  ;;  %v76_v29 = vadd.f32 %v150_v2, %v48_v16  ;;  %v50_v30 = vmul.f32 %v145_v1, %v22_v18  ;;  %v28_v32 = vld [vmem:[%s338_s0 + $0x70] sm:$0xff]  ;;  %v29_v33 = vld [vmem:[%s338_s0 + $0x78] sm:$0xff] }
   0x7   :  { %92 = vst.msk [vmem:[%s341_s3] sm:$0xff] %vm91_vm0, %v70_v13  ;;  %v74_v27 = vadd.f32 %v150_v2, %v46_v14  ;;  %93 = vst.msk [vmem:[%s341_s3 + $0x8] sm:$0xff] %vm91_vm0, %v71_v20  ;;  %v77_v34 = vadd.f32 %v150_v2, %v49_v23  ;;  %v51_v35 = vmul.f32 %v145_v1, %v23_v19  ;;  %v30_v38 = vld [vmem:[%s338_s0 + $0x80] sm:$0xff]  ;;  %v31_v43 = vld [vmem:[%s338_s0 + $0x88] sm:$0xff] }
   0x8   :  { %94 = vst.msk [vmem:[%s341_s3 + $0x10] sm:$0xff] %vm91_vm0, %v72_v21  ;;  %95 = vst.msk [vmem:[%s341_s3 + $0x18] sm:$0xff] %vm91_vm0, %v73_v22  ;;  %v52_v36 = vmul.f32 %v145_v1, %v24_v24  ;;  %v53_v37 = vmul.f32 %v145_v1, %v25_v25  ;;  %v78_v39 = vadd.f32 %v150_v2, %v50_v30  ;;  %v32_v44 = vld [vmem:[%s338_s0 + $0x90] sm:$0xff]  ;;  %v33_v45 = vld [vmem:[%s338_s0 + $0x98] sm:$0xff] }
   0x9   :  { %96 = vst.msk [vmem:[%s341_s3 + $0x20] sm:$0xff] %vm91_vm0, %v74_v27  ;;  %97 = vst.msk [vmem:[%s341_s3 + $0x28] sm:$0xff] %vm91_vm0, %v75_v28  ;;  %v54_v40 = vmul.f32 %v145_v1, %v26_v26  ;;  %v55_v41 = vmul.f32 %v145_v1, %v27_v31  ;;  %v56_v42 = vmul.f32 %v145_v1, %v28_v32  ;;  %v34_v50 = vld [vmem:[%s338_s0 + $0xa0] sm:$0xff] }
   0xa   :  { %98 = vst.msk [vmem:[%s341_s3 + $0x30] sm:$0xff] %vm91_vm0, %v76_v29  ;;  %99 = vst.msk [vmem:[%s341_s3 + $0x38] sm:$0xff] %vm91_vm0, %v77_v34  ;;  %v79_v46 = vadd.f32 %v150_v2, %v51_v35  ;;  %v80_v47 = vadd.f32 %v150_v2, %v52_v36  ;;  %v81_v48 = vadd.f32 %v150_v2, %v53_v37 }
   0xb   :  { %v57_v49 = vmul.f32 %v145_v1, %v29_v33  ;;  %100 = vst.msk [vmem:[%s341_s3 + $0x40] sm:$0xff] %vm91_vm0, %v78_v39  ;;  %v82_v51 = vadd.f32 %v150_v2, %v54_v40  ;;  %v83_v52 = vadd.f32 %v150_v2, %v55_v41  ;;  %v84_v53 = vadd.f32 %v150_v2, %v56_v42 }
   0xc   :  { %v58_v54 = vmul.f32 %v145_v1, %v30_v38  ;;  %101 = vst.msk [vmem:[%s341_s3 + $0x48] sm:$0xff] %vm91_vm0, %v79_v46  ;;  %102 = vst.msk [vmem:[%s341_s3 + $0x50] sm:$0xff] %vm91_vm0, %v80_v47  ;;  %v59_v56 = vmul.f32 %v145_v1, %v31_v43  ;;  %v60_v57 = vmul.f32 %v145_v1, %v32_v44 }
   0xd   :  { %103 = vst.msk [vmem:[%s341_s3 + $0x58] sm:$0xff] %vm91_vm0, %v81_v48  ;;  %v85_v55 = vadd.f32 %v150_v2, %v57_v49  ;;  %v61_v58 = vmul.f32 %v145_v1, %v33_v45  ;;  %104 = vst.msk [vmem:[%s341_s3 + $0x60] sm:$0xff] %vm91_vm0, %v82_v51  ;;  %v62_v60 = vmul.f32 %v145_v1, %v34_v50 }
   0xe   :  { %105 = vst.msk [vmem:[%s341_s3 + $0x68] sm:$0xff] %vm91_vm0, %v83_v52  ;;  %106 = vst.msk [vmem:[%s341_s3 + $0x70] sm:$0xff] %vm91_vm0, %v84_v53  ;;  %v86_v59 = vadd.f32 %v150_v2, %v58_v54  ;;  %v87_v61 = vadd.f32 %v150_v2, %v59_v56  ;;  %v88_v62 = vadd.f32 %v150_v2, %v60_v57 }
   0xf   :  { %107 = vst.msk [vmem:[%s341_s3 + $0x78] sm:$0xff] %vm91_vm0, %v85_v55  ;;  %v89_v63 = vadd.f32 %v150_v2, %v61_v58  ;;  %v90_v0 = vadd.f32 %v150_v2, %v62_v60 }
  0x10   :  { %108 = vst.msk [vmem:[%s341_s3 + $0x80] sm:$0xff] %vm91_vm0, %v86_v59  ;;  %109 = vst.msk [vmem:[%s341_s3 + $0x88] sm:$0xff] %vm91_vm0, %v87_v61 }
  0x11   :  { %110 = vst.msk [vmem:[%s341_s3 + $0x90] sm:$0xff] %vm91_vm0, %v88_v62  ;;  %111 = vst.msk [vmem:[%s341_s3 + $0x98] sm:$0xff] %vm91_vm0, %v89_v63 }
  0x12   :  { %112 = vst.msk [vmem:[%s341_s3 + $0xa0] sm:$0xff] %vm91_vm0, %v90_v0 }

// kernel: unet_innermost_forward.4
= control target key start
LH: loop header
LB: loop body
LE: loop exit
PB: predicated region body
PF: predicated region fallthrough
CT: control target
= control target key end

     0   :  { %v929_v0 = vmov 0.0   ;;  %vm390_vm0 = vcmask 1043456   ;;  %vm930_vm1 = vmmov 0   ;;  %vm326_vm2 = vcmask 31744   ;;  %s1351_s1 = inlined_call_operand.vmem [shape: bf16[32,16], index: 1, kind: input, shape index: {}]   ;;  %s1352_s4 = inlined_call_operand.vmem [shape: f32[4,16], index: 4, kind: input, shape index: {}]   ;;  %s1353_s3 = inlined_call_operand.vmem [shape: f32[168,4], index: 3, kind: input, shape index: {}]   ;;  %s1354_s0 = inlined_call_operand.vmem [shape: bf16[168,32], index: 0, kind: input, shape index: {}]   ;;  %s1355_s6 = inlined_call_operand.vmem [shape: f32[1,16], index: 6, kind: output, shape index: {1}]   ;;  %s1356_s7 = inlined_call_operand.vmem [shape: f32[1,16], index: 7, kind: output, shape index: {2}]   ;;  %s1357_s2 = inlined_call_operand.vmem [shape: f32[1,16], index: 2, kind: input, shape index: {}]   ;;  %s1358_s5 = inlined_call_operand.vmem [shape: f32[168,16], index: 5, kind: output, shape index: {0}]  }
   0x1   :  { %801 = vmatprep.subr.bf16.mxu0 %v929_v0  ;;  %v916_v1 = vld [vmem:[%s1351_s1] sm:$0xff]   ;;  %849 = vmatprep.subr.mxu1 %v929_v0  ;;  %v917_v2 = vld [vmem:[%s1351_s1 + $0x8] sm:$0xff]   ;;  %vm128_vm3 = vcmask 261120   ;;  %v306_v7 = vld [vmem:[%s1353_s3 + $0x10] sm:$0xff]  ;;  %vm28_vm4 = vcmask 122880   ;;  %vm282_vm5 = vcmask 130048  }
   0x2   :  { %805 = vmatprep.mubr.msk.bf16.mxu0 %vm930_vm1, %v929_v0  ;;  %851 = vmatprep.mubr.msk.f32.mxu1 %vm930_vm1, %v929_v0  ;;  %v325_v3 = vld [vmem:[%s1352_s4] sm:$0xf]  ;;  %v305_v6 = vld [vmem:[%s1353_s3 + $0x8] sm:$0xff]  ;;  %v307_v9 = vld [vmem:[%s1353_s3 + $0x18] sm:$0xff]  ;;  %29 = vst.msk [vmem:[%s1355_s6] sm:$0x1] %vm28_vm4, %v929_v0 }
   0x3   :  { %802 = vmatpush3.bf16.msra.mxu0 %v916_v1  ;;  %850 = vmatpush3.msk.msra.mxu1 %vm390_vm0, %v325_v3  ;;  %v304_v4 = vld [vmem:[%s1353_s3] sm:$0xff]  ;;  %v919_v8 = vld [vmem:[%s1354_s0 + $0x8] sm:$0xff]   ;;  %v920_v11 = vld [vmem:[%s1354_s0 + $0x10] sm:$0xff]   ;;  %30 = vst.msk [vmem:[%s1356_s7] sm:$0x1] %vm28_vm4, %v929_v0 }
   0x4   :  { %803 = vmatprep.subr.bf16.mxu0 %v929_v0  ;;  %852 = vmatmul.mubr.msk.f32.vlgmr.msra.gmra.mrb[0].mxu1 %vm326_vm2, %v304_v4  ;;  %v918_v5 = vld [vmem:[%s1354_s0] sm:$0xff]   ;;  %v309_v12 = vld [vmem:[%s1353_s3 + $0x28] sm:$0xff]  ;;  %v310_v13 = vld [vmem:[%s1353_s3 + $0x30] sm:$0xff] }
   0x5   :  { %854 = vmatprep.mubr.msk.f32.mxu1 %vm930_vm1, %v929_v0  ;;  %v308_v10 = vld [vmem:[%s1353_s3 + $0x20] sm:$0xff]  ;;  %v921_v14 = vld [vmem:[%s1354_s0 + $0x18] sm:$0xff]   ;;  %v313_v18 = vld [vmem:[%s1353_s3 + $0x48] sm:$0xff] }
   0x6   :  { %v311_v15 = vld [vmem:[%s1353_s3 + $0x38] sm:$0xff]  ;;  %v312_v16 = vld [vmem:[%s1353_s3 + $0x40] sm:$0xff]  ;;  %v314_v19 = vld [vmem:[%s1353_s3 + $0x50] sm:$0xff] }
   0x7   :  { %804 = vmatpush3.bf16.msra.mxu0 %v917_v2  ;;  %v922_v17 = vld [vmem:[%s1354_s0 + $0x20] sm:$0xff]   ;;  %v923_v20 = vld [vmem:[%s1354_s0 + $0x28] sm:$0xff]   ;;  %v315_v21 = vld [vmem:[%s1353_s3 + $0x58] sm:$0xff] }
   0x8   :  { %855 = vmatmul.mubr.msk.f32.gmra.mrb[2].mxu1 %vm326_vm2, %v305_v6  ;;  %v316_v22 = vld [vmem:[%s1353_s3 + $0x60] sm:$0xff]  ;;  %v924_v23 = vld [vmem:[%s1354_s0 + $0x30] sm:$0xff]   ;;  %v317_v24 = vld [vmem:[%s1353_s3 + $0x68] sm:$0xff] }
   0x9   :  { %857 = vmatprep.mubr.msk.f32.mxu1 %vm930_vm1, %v929_v0  ;;  %v318_v25 = vld [vmem:[%s1353_s3 + $0x70] sm:$0xff]  ;;  %v925_v26 = vld [vmem:[%s1354_s0 + $0x38] sm:$0xff]   ;;  %v320_v28 = vld [vmem:[%s1353_s3 + $0x80] sm:$0xff] }
   0xa   :  { %806 = vmatmul.mubr.msk.bf16.vlgmr.msra.gmra.mrb[0].mxu0 %vm128_vm3, %v918_v5  ;;  %v319_v27 = vld [vmem:[%s1353_s3 + $0x78] sm:$0xff]  ;;  %v926_v29 = vld [vmem:[%s1354_s0 + $0x40] sm:$0xff]   ;;  %v321_v30 = vld [vmem:[%s1353_s3 + $0x88] sm:$0xff] }
   0xb   :  { %809 = vmatprep.mubr.msk.bf16.mxu0 %vm930_vm1, %v929_v0  ;;  %v322_v31 = vld [vmem:[%s1353_s3 + $0x90] sm:$0xff]  ;;  %v927_v32 = vld [vmem:[%s1354_s0 + $0x48] sm:$0xff]   ;;  %v323_v33 = vld [vmem:[%s1353_s3 + $0x98] sm:$0xff] }
   0xc   :  { %858 = vmatmul.mubr.msk.f32.gmra.mrb[4].mxu1 %vm326_vm2, %v306_v7  ;;  %v324_v34 = vld [vmem:[%s1353_s3 + $0xa0] sm:$0xff]  ;;  %v928_v35 = vld [vmem:[%s1354_s0 + $0x50] ss:$0 sps:$4 sm:$0xff]  }
   0xd   :  { %860 = vmatprep.mubr.msk.f32.mxu1 %vm930_vm1, %v929_v0  ;;  %v1188_v38 = vld [vmem:[%s1357_s2] ss:$0 sm:$0xff] }
  0x10   :  { %861 = vmatmul.mubr.msk.f32.gmra.mrb[6].mxu1 %vm326_vm2, %v307_v9 }
  0x11   :  { %863 = vmatprep.mubr.msk.f32.mxu1 %vm930_vm1, %v929_v0 }
  0x12   :  { %810 = vmatmul.mubr.msk.bf16.gmra.mrb[4].mxu0 %vm128_vm3, %v919_v8 }
  0x13   :  { %813 = vmatprep.mubr.msk.bf16.mxu0 %vm930_vm1, %v929_v0 }
  0x14   :  { %864 = vmatmul.mubr.msk.f32.gmra.mrb[8].mxu1 %vm326_vm2, %v308_v10 }
  0x15   :  { %866 = vmatprep.mubr.msk.f32.mxu1 %vm930_vm1, %v929_v0 }
  0x18   :  { %867 = vmatmul.mubr.msk.f32.gmra.mrb[10].mxu1 %vm326_vm2, %v309_v12 }
  0x19   :  { %869 = vmatprep.mubr.msk.f32.mxu1 %vm930_vm1, %v929_v0 }
  0x1a   :  { %814 = vmatmul.mubr.msk.bf16.gmra.mrb[8].mxu0 %vm128_vm3, %v920_v11 }
  0x1b   :  { %817 = vmatprep.mubr.msk.bf16.mxu0 %vm930_vm1, %v929_v0 }
  0x1c   :  { %870 = vmatmul.mubr.msk.f32.gmra.mrb[12].mxu1 %vm326_vm2, %v310_v13 }
  0x1d   :  { %872 = vmatprep.mubr.msk.f32.mxu1 %vm930_vm1, %v929_v0 }
  0x20   :  { %873 = vmatmul.mubr.msk.f32.gmra.mrb[14].mxu1 %vm326_vm2, %v311_v15 }
  0x21   :  { %875 = vmatprep.mubr.msk.f32.mxu1 %vm930_vm1, %v929_v0 }
  0x22   :  { %818 = vmatmul.mubr.msk.bf16.gmra.mrb[12].mxu0 %vm128_vm3, %v921_v14 }
  0x23   :  { %821 = vmatprep.mubr.msk.bf16.mxu0 %vm930_vm1, %v929_v0 }
  0x24   :  { %876 = vmatmul.mubr.msk.f32.gmra.mrb[16].mxu1 %vm326_vm2, %v312_v16 }
  0x25   :  { %878 = vmatprep.mubr.msk.f32.mxu1 %vm930_vm1, %v929_v0 }
  0x28   :  { %879 = vmatmul.mubr.msk.f32.gmra.mrb[18].mxu1 %vm326_vm2, %v313_v18 }
  0x29   :  { %881 = vmatprep.mubr.msk.f32.mxu1 %vm930_vm1, %v929_v0 }
  0x2a   :  { %822 = vmatmul.mubr.msk.bf16.gmra.mrb[16].mxu0 %vm128_vm3, %v922_v17 }
  0x2b   :  { %825 = vmatprep.mubr.msk.bf16.mxu0 %vm930_vm1, %v929_v0 }
  0x2c   :  { %882 = vmatmul.mubr.msk.f32.gmra.mrb[20].mxu1 %vm326_vm2, %v314_v19 }
  0x2d   :  { %884 = vmatprep.mubr.msk.f32.mxu1 %vm930_vm1, %v929_v0 }
  0x30   :  { %885 = vmatmul.mubr.msk.f32.gmra.mrb[22].mxu1 %vm326_vm2, %v315_v21 }
  0x31   :  { %887 = vmatprep.mubr.msk.f32.mxu1 %vm930_vm1, %v929_v0 }
  0x32   :  { %826 = vmatmul.mubr.msk.bf16.gmra.mrb[20].mxu0 %vm128_vm3, %v923_v20 }
  0x33   :  { %829 = vmatprep.mubr.msk.bf16.mxu0 %vm930_vm1, %v929_v0 }
  0x34   :  { %888 = vmatmul.mubr.msk.f32.gmra.mrb[24].mxu1 %vm326_vm2, %v316_v22 }
  0x35   :  { %890 = vmatprep.mubr.msk.f32.mxu1 %vm930_vm1, %v929_v0 }
  0x38   :  { %891 = vmatmul.mubr.msk.f32.gmra.mrb[26].mxu1 %vm326_vm2, %v317_v24 }
  0x39   :  { %893 = vmatprep.mubr.msk.f32.mxu1 %vm930_vm1, %v929_v0 }
  0x3a   :  { %830 = vmatmul.mubr.msk.bf16.gmra.mrb[24].mxu0 %vm128_vm3, %v924_v23 }
  0x3b   :  { %833 = vmatprep.mubr.msk.bf16.mxu0 %vm930_vm1, %v929_v0 }
  0x3c   :  { %894 = vmatmul.mubr.msk.f32.gmra.mrb[28].mxu1 %vm326_vm2, %v318_v25 }
  0x3d   :  { %896 = vmatprep.mubr.msk.f32.mxu1 %vm930_vm1, %v929_v0 }
  0x40   :  { %897 = vmatmul.mubr.msk.f32.gmra.mrb[30].mxu1 %vm326_vm2, %v319_v27 }
  0x41   :  { %899 = vmatprep.mubr.msk.f32.mxu1 %vm930_vm1, %v929_v0 }
  0x42   :  { %834 = vmatmul.mubr.msk.bf16.gmra.mrb[28].mxu0 %vm128_vm3, %v925_v26 }
  0x43   :  { %837 = vmatprep.mubr.msk.bf16.mxu0 %vm930_vm1, %v929_v0 }
  0x44   :  { %900 = vmatmul.mubr.msk.f32.gmra.mrb[32].mxu1 %vm326_vm2, %v320_v28 }
  0x45   :  { %902 = vmatprep.mubr.msk.f32.mxu1 %vm930_vm1, %v929_v0 }
  0x48   :  { %903 = vmatmul.mubr.msk.f32.gmra.mrb[34].mxu1 %vm326_vm2, %v321_v30 }
  0x49   :  { %905 = vmatprep.mubr.msk.f32.mxu1 %vm930_vm1, %v929_v0 }
  0x4a   :  { %838 = vmatmul.mubr.msk.bf16.gmra.mrb[32].mxu0 %vm128_vm3, %v926_v29 }
  0x4b   :  { %841 = vmatprep.mubr.msk.bf16.mxu0 %vm930_vm1, %v929_v0 }
  0x4c   :  { %906 = vmatmul.mubr.msk.f32.gmra.mrb[36].mxu1 %vm326_vm2, %v322_v31 }
  0x4d   :  { %908 = vmatprep.mubr.msk.f32.mxu1 %vm930_vm1, %v929_v0 }
  0x50   :  { %909 = vmatmul.mubr.msk.f32.gmra.mrb[38].mxu1 %vm326_vm2, %v323_v33 }
  0x51   :  { %911 = vmatprep.mubr.msk.f32.mxu1 %vm930_vm1, %v929_v0 }
  0x52   :  { %842 = vmatmul.mubr.msk.bf16.gmra.mrb[36].mxu0 %vm128_vm3, %v927_v32 }
  0x53   :  { %845 = vmatprep.mubr.msk.bf16.mxu0 %vm930_vm1, %v929_v0 }
  0x54   :  { %912 = vmatmul.mubr.msk.f32.gmra.mrb[40].mxu1 %vm326_vm2, %v324_v34 }
  0x5a   :  { %846 = vmatmul.mubr.msk.bf16.gmra.mrb[40].mxu0 %vm128_vm3, %v928_v35 }
  0xd7   :  { %v460_v36 = vpop.f32.mrb[0].mxu1 }
  0xd8   :  { %v853_v37 = vpop.f32.mrb[1].mxu1 }
  0xdb   :  { %v465_v39 = vpop.f32.mrb[2].mxu1 }
  0xdc   :  { %v856_v41 = vpop.f32.mrb[3].mxu1 }
  0xdd   :  { %v196_v40 = vpop.f32.mrb[0].mxu0 }
  0xde   :  { %v197_v42 = vadd.f32 %v1188_v38, %v196_v40  ;;  %v807_v43 = vpop.f32.mrb[1].mxu0 }
  0xdf   :  { %v199_v44 = vpop.f32.mrb[2].mxu0  ;;  %v470_v48 = vpop.f32.mrb[4].mxu1 }
  0xe0   :  { %283 = vst.msk [vmem:[%s1358_s5] sm:$0xff] %vm282_vm5, %v197_v42  ;;  %v564_v45 = vmul.f32 %v460_v36, %v197_v42  ;;  %v200_v46 = vadd.f32 %v1188_v38, %v199_v44  ;;  %v808_v47 = vpop.f32.mrb[3].mxu0  ;;  %v859_v49 = vpop.f32.mrb[5].mxu1 }
  0xe2   :  { %v637_v50 = vmul.f32 %v564_v45, %v197_v42  ;;  %284 = vst.msk [vmem:[%s1358_s5 + $0x8] sm:$0xff] %vm282_vm5, %v200_v46  ;;  %v565_v51 = vmul.f32 %v465_v39, %v200_v46  ;;  %v586_v52 = vsel %vm282_vm5, %v564_v45, 0.0 }
  0xe3   :  { %v475_v55 = vpop.f32.mrb[6].mxu1 }
  0xe4   :  { %v587_v53 = vsel %vm282_vm5, %v565_v51, 0.0  ;;  %v638_v54 = vmul.f32 %v565_v51, %v200_v46  ;;  %v862_v58 = vpop.f32.mrb[7].mxu1  ;;  %v658_v59 = vsel %vm282_vm5, %v637_v50, 0.0 }
  0xe5   :  { %v588_v56 = vadd.f32 %v587_v53, %v586_v52  ;;  %v204_v57 = vpop.f32.mrb[4].mxu0 }
  0xe6   :  { %v659_v60 = vsel %vm282_vm5, %v638_v54, 0.0  ;;  %v205_v61 = vadd.f32 %v1188_v38, %v204_v57  ;;  %v811_v62 = vpop.f32.mrb[5].mxu0 }
  0xe7   :  { %v660_v63 = vadd.f32 %v659_v60, %v658_v59  ;;  %v207_v0 = vpop.f32.mrb[6].mxu0  ;;  %v480_v4 = vpop.f32.mrb[8].mxu1 }
  0xe8   :  { %285 = vst.msk [vmem:[%s1358_s5 + $0x10] sm:$0xff] %vm282_vm5, %v205_v61  ;;  %v566_v1 = vmul.f32 %v470_v48, %v205_v61  ;;  %v208_v2 = vadd.f32 %v1188_v38, %v207_v0  ;;  %v812_v3 = vpop.f32.mrb[7].mxu0  ;;  %v865_v5 = vpop.f32.mrb[9].mxu1 }
  0xea   :  { %v589_v6 = vsel %vm282_vm5, %v566_v1, 0.0  ;;  %v639_v7 = vmul.f32 %v566_v1, %v205_v61  ;;  %286 = vst.msk [vmem:[%s1358_s5 + $0x18] sm:$0xff] %vm282_vm5, %v208_v2  ;;  %v567_v8 = vmul.f32 %v475_v55, %v208_v2 }
  0xeb   :  { %v590_v9 = vadd.f32 %v589_v6, %v588_v56  ;;  %v485_v13 = vpop.f32.mrb[10].mxu1 }
  0xec   :  { %v661_v10 = vsel %vm282_vm5, %v639_v7, 0.0  ;;  %v591_v11 = vsel %vm282_vm5, %v567_v8, 0.0  ;;  %v640_v12 = vmul.f32 %v567_v8, %v208_v2  ;;  %v868_v17 = vpop.f32.mrb[11].mxu1 }
  0xed   :  { %v662_v14 = vadd.f32 %v661_v10, %v660_v63  ;;  %v592_v15 = vadd.f32 %v591_v11, %v590_v9  ;;  %v212_v16 = vpop.f32.mrb[8].mxu0 }
  0xee   :  { %v663_v18 = vsel %vm282_vm5, %v640_v12, 0.0  ;;  %v213_v19 = vadd.f32 %v1188_v38, %v212_v16  ;;  %v815_v20 = vpop.f32.mrb[9].mxu0 }
  0xef   :  { %v664_v21 = vadd.f32 %v663_v18, %v662_v14  ;;  %v215_v22 = vpop.f32.mrb[10].mxu0  ;;  %v490_v26 = vpop.f32.mrb[12].mxu1 }
  0xf0   :  { %287 = vst.msk [vmem:[%s1358_s5 + $0x20] sm:$0xff] %vm282_vm5, %v213_v19  ;;  %v568_v23 = vmul.f32 %v480_v4, %v213_v19  ;;  %v216_v24 = vadd.f32 %v1188_v38, %v215_v22  ;;  %v816_v25 = vpop.f32.mrb[11].mxu0  ;;  %v871_v27 = vpop.f32.mrb[13].mxu1 }
  0xf2   :  { %v593_v28 = vsel %vm282_vm5, %v568_v23, 0.0  ;;  %v641_v29 = vmul.f32 %v568_v23, %v213_v19  ;;  %288 = vst.msk [vmem:[%s1358_s5 + $0x28] sm:$0xff] %vm282_vm5, %v216_v24  ;;  %v569_v30 = vmul.f32 %v485_v13, %v216_v24 }
  0xf3   :  { %v594_v31 = vadd.f32 %v593_v28, %v592_v15  ;;  %v495_v35 = vpop.f32.mrb[14].mxu1 }
  0xf4   :  { %v665_v32 = vsel %vm282_vm5, %v641_v29, 0.0  ;;  %v595_v33 = vsel %vm282_vm5, %v569_v30, 0.0  ;;  %v642_v34 = vmul.f32 %v569_v30, %v216_v24  ;;  %v874_v40 = vpop.f32.mrb[15].mxu1 }
  0xf5   :  { %v666_v36 = vadd.f32 %v665_v32, %v664_v21  ;;  %v596_v37 = vadd.f32 %v595_v33, %v594_v31  ;;  %v220_v39 = vpop.f32.mrb[12].mxu0 }
  0xf6   :  { %v667_v41 = vsel %vm282_vm5, %v642_v34, 0.0  ;;  %v221_v42 = vadd.f32 %v1188_v38, %v220_v39  ;;  %v819_v43 = vpop.f32.mrb[13].mxu0 }
  0xf7   :  { %v668_v44 = vadd.f32 %v667_v41, %v666_v36  ;;  %v223_v45 = vpop.f32.mrb[14].mxu0  ;;  %v500_v49 = vpop.f32.mrb[16].mxu1 }
  0xf8   :  { %289 = vst.msk [vmem:[%s1358_s5 + $0x30] sm:$0xff] %vm282_vm5, %v221_v42  ;;  %v570_v46 = vmul.f32 %v490_v26, %v221_v42  ;;  %v224_v47 = vadd.f32 %v1188_v38, %v223_v45  ;;  %v820_v48 = vpop.f32.mrb[15].mxu0  ;;  %v877_v50 = vpop.f32.mrb[17].mxu1 }
  0xfa   :  { %v597_v51 = vsel %vm282_vm5, %v570_v46, 0.0  ;;  %v643_v52 = vmul.f32 %v570_v46, %v221_v42  ;;  %290 = vst.msk [vmem:[%s1358_s5 + $0x38] sm:$0xff] %vm282_vm5, %v224_v47  ;;  %v571_v53 = vmul.f32 %v495_v35, %v224_v47 }
  0xfb   :  { %v598_v54 = vadd.f32 %v597_v51, %v596_v37  ;;  %v505_v58 = vpop.f32.mrb[18].mxu1 }
  0xfc   :  { %v669_v55 = vsel %vm282_vm5, %v643_v52, 0.0  ;;  %v599_v56 = vsel %vm282_vm5, %v571_v53, 0.0  ;;  %v644_v57 = vmul.f32 %v571_v53, %v224_v47  ;;  %v880_v62 = vpop.f32.mrb[19].mxu1 }
  0xfd   :  { %v670_v59 = vadd.f32 %v669_v55, %v668_v44  ;;  %v600_v60 = vadd.f32 %v599_v56, %v598_v54  ;;  %v228_v61 = vpop.f32.mrb[16].mxu0 }
  0xfe   :  { %v671_v63 = vsel %vm282_vm5, %v644_v57, 0.0  ;;  %v229_v0 = vadd.f32 %v1188_v38, %v228_v61  ;;  %v823_v1 = vpop.f32.mrb[17].mxu0 }
  0xff   :  { %v672_v2 = vadd.f32 %v671_v63, %v670_v59  ;;  %v231_v3 = vpop.f32.mrb[18].mxu0  ;;  %v510_v7 = vpop.f32.mrb[20].mxu1 }
 0x100   :  { %291 = vst.msk [vmem:[%s1358_s5 + $0x40] sm:$0xff] %vm282_vm5, %v229_v0  ;;  %v572_v4 = vmul.f32 %v500_v49, %v229_v0  ;;  %v232_v5 = vadd.f32 %v1188_v38, %v231_v3  ;;  %v824_v6 = vpop.f32.mrb[19].mxu0  ;;  %v883_v8 = vpop.f32.mrb[21].mxu1 }
 0x102   :  { %v601_v9 = vsel %vm282_vm5, %v572_v4, 0.0  ;;  %v645_v10 = vmul.f32 %v572_v4, %v229_v0  ;;  %292 = vst.msk [vmem:[%s1358_s5 + $0x48] sm:$0xff] %vm282_vm5, %v232_v5  ;;  %v573_v11 = vmul.f32 %v505_v58, %v232_v5 }
 0x103   :  { %v602_v12 = vadd.f32 %v601_v9, %v600_v60  ;;  %v515_v16 = vpop.f32.mrb[22].mxu1 }
 0x104   :  { %v673_v13 = vsel %vm282_vm5, %v645_v10, 0.0  ;;  %v603_v14 = vsel %vm282_vm5, %v573_v11, 0.0  ;;  %v646_v15 = vmul.f32 %v573_v11, %v232_v5  ;;  %v886_v20 = vpop.f32.mrb[23].mxu1 }
 0x105   :  { %v674_v17 = vadd.f32 %v673_v13, %v672_v2  ;;  %v604_v18 = vadd.f32 %v603_v14, %v602_v12  ;;  %v236_v19 = vpop.f32.mrb[20].mxu0 }
 0x106   :  { %v675_v21 = vsel %vm282_vm5, %v646_v15, 0.0  ;;  %v237_v22 = vadd.f32 %v1188_v38, %v236_v19  ;;  %v827_v23 = vpop.f32.mrb[21].mxu0 }
 0x107   :  { %v676_v24 = vadd.f32 %v675_v21, %v674_v17  ;;  %v239_v25 = vpop.f32.mrb[22].mxu0  ;;  %v520_v29 = vpop.f32.mrb[24].mxu1 }
 0x108   :  { %293 = vst.msk [vmem:[%s1358_s5 + $0x50] sm:$0xff] %vm282_vm5, %v237_v22  ;;  %v574_v26 = vmul.f32 %v510_v7, %v237_v22  ;;  %v240_v27 = vadd.f32 %v1188_v38, %v239_v25  ;;  %v828_v28 = vpop.f32.mrb[23].mxu0  ;;  %v889_v30 = vpop.f32.mrb[25].mxu1 }
 0x10a   :  { %v605_v31 = vsel %vm282_vm5, %v574_v26, 0.0  ;;  %v647_v32 = vmul.f32 %v574_v26, %v237_v22  ;;  %294 = vst.msk [vmem:[%s1358_s5 + $0x58] sm:$0xff] %vm282_vm5, %v240_v27  ;;  %v575_v33 = vmul.f32 %v515_v16, %v240_v27 }
 0x10b   :  { %v606_v34 = vadd.f32 %v605_v31, %v604_v18  ;;  %v525_v39 = vpop.f32.mrb[26].mxu1 }
 0x10c   :  { %v677_v35 = vsel %vm282_vm5, %v647_v32, 0.0  ;;  %v607_v36 = vsel %vm282_vm5, %v575_v33, 0.0  ;;  %v648_v37 = vmul.f32 %v575_v33, %v240_v27  ;;  %v892_v43 = vpop.f32.mrb[27].mxu1 }
 0x10d   :  { %v678_v40 = vadd.f32 %v677_v35, %v676_v24  ;;  %v608_v41 = vadd.f32 %v607_v36, %v606_v34  ;;  %v244_v42 = vpop.f32.mrb[24].mxu0 }
 0x10e   :  { %v679_v44 = vsel %vm282_vm5, %v648_v37, 0.0  ;;  %v245_v45 = vadd.f32 %v1188_v38, %v244_v42  ;;  %v831_v46 = vpop.f32.mrb[25].mxu0 }
 0x10f   :  { %v680_v47 = vadd.f32 %v679_v44, %v678_v40  ;;  %v247_v48 = vpop.f32.mrb[26].mxu0  ;;  %v530_v52 = vpop.f32.mrb[28].mxu1 }
 0x110   :  { %295 = vst.msk [vmem:[%s1358_s5 + $0x60] sm:$0xff] %vm282_vm5, %v245_v45  ;;  %v576_v49 = vmul.f32 %v520_v29, %v245_v45  ;;  %v248_v50 = vadd.f32 %v1188_v38, %v247_v48  ;;  %v832_v51 = vpop.f32.mrb[27].mxu0  ;;  %v895_v53 = vpop.f32.mrb[29].mxu1 }
 0x112   :  { %v609_v54 = vsel %vm282_vm5, %v576_v49, 0.0  ;;  %v649_v55 = vmul.f32 %v576_v49, %v245_v45  ;;  %296 = vst.msk [vmem:[%s1358_s5 + $0x68] sm:$0xff] %vm282_vm5, %v248_v50  ;;  %v577_v56 = vmul.f32 %v525_v39, %v248_v50 }
 0x113   :  { %v610_v57 = vadd.f32 %v609_v54, %v608_v41  ;;  %v535_v61 = vpop.f32.mrb[30].mxu1 }
 0x114   :  { %v681_v58 = vsel %vm282_vm5, %v649_v55, 0.0  ;;  %v611_v59 = vsel %vm282_vm5, %v577_v56, 0.0  ;;  %v650_v60 = vmul.f32 %v577_v56, %v248_v50  ;;  %v898_v1 = vpop.f32.mrb[31].mxu1 }
 0x115   :  { %v682_v62 = vadd.f32 %v681_v58, %v680_v47  ;;  %v612_v63 = vadd.f32 %v611_v59, %v610_v57  ;;  %v252_v0 = vpop.f32.mrb[28].mxu0 }
 0x116   :  { %v683_v2 = vsel %vm282_vm5, %v650_v60, 0.0  ;;  %v253_v3 = vadd.f32 %v1188_v38, %v252_v0  ;;  %v835_v4 = vpop.f32.mrb[29].mxu0 }
 0x117   :  { %v684_v5 = vadd.f32 %v683_v2, %v682_v62  ;;  %v255_v6 = vpop.f32.mrb[30].mxu0  ;;  %v540_v10 = vpop.f32.mrb[32].mxu1 }
 0x118   :  { %297 = vst.msk [vmem:[%s1358_s5 + $0x70] sm:$0xff] %vm282_vm5, %v253_v3  ;;  %v578_v7 = vmul.f32 %v530_v52, %v253_v3  ;;  %v256_v8 = vadd.f32 %v1188_v38, %v255_v6  ;;  %v836_v9 = vpop.f32.mrb[31].mxu0  ;;  %v901_v11 = vpop.f32.mrb[33].mxu1 }
 0x11a   :  { %v613_v12 = vsel %vm282_vm5, %v578_v7, 0.0  ;;  %v651_v13 = vmul.f32 %v578_v7, %v253_v3  ;;  %298 = vst.msk [vmem:[%s1358_s5 + $0x78] sm:$0xff] %vm282_vm5, %v256_v8  ;;  %v579_v14 = vmul.f32 %v535_v61, %v256_v8 }
 0x11b   :  { %v614_v15 = vadd.f32 %v613_v12, %v612_v63  ;;  %v545_v19 = vpop.f32.mrb[34].mxu1 }
 0x11c   :  { %v685_v16 = vsel %vm282_vm5, %v651_v13, 0.0  ;;  %v615_v17 = vsel %vm282_vm5, %v579_v14, 0.0  ;;  %v652_v18 = vmul.f32 %v579_v14, %v256_v8  ;;  %v904_v23 = vpop.f32.mrb[35].mxu1 }
 0x11d   :  { %v686_v20 = vadd.f32 %v685_v16, %v684_v5  ;;  %v616_v21 = vadd.f32 %v615_v17, %v614_v15  ;;  %v260_v22 = vpop.f32.mrb[32].mxu0  ;;  %v585_v23 = vld [vmem:[%s1355_s6] sm:$0x1] }
 0x11e   :  { %v687_v24 = vsel %vm282_vm5, %v652_v18, 0.0  ;;  %v261_v25 = vadd.f32 %v1188_v38, %v260_v22  ;;  %v839_v26 = vpop.f32.mrb[33].mxu0 }
 0x11f   :  { %v688_v27 = vadd.f32 %v687_v24, %v686_v20  ;;  %v263_v28 = vpop.f32.mrb[34].mxu0  ;;  %v550_v32 = vpop.f32.mrb[36].mxu1  ;;  %v636_v26 = vld [vmem:[%s1356_s7] sm:$0x1] }
 0x120   :  { %299 = vst.msk [vmem:[%s1358_s5 + $0x80] sm:$0xff] %vm282_vm5, %v261_v25  ;;  %v580_v29 = vmul.f32 %v540_v10, %v261_v25  ;;  %v264_v30 = vadd.f32 %v1188_v38, %v263_v28  ;;  %v840_v31 = vpop.f32.mrb[35].mxu0  ;;  %v907_v33 = vpop.f32.mrb[37].mxu1 }
 0x122   :  { %v617_v34 = vsel %vm282_vm5, %v580_v29, 0.0  ;;  %v653_v35 = vmul.f32 %v580_v29, %v261_v25  ;;  %300 = vst.msk [vmem:[%s1358_s5 + $0x88] sm:$0xff] %vm282_vm5, %v264_v30  ;;  %v581_v36 = vmul.f32 %v545_v19, %v264_v30 }
 0x123   :  { %v618_v37 = vadd.f32 %v617_v34, %v616_v21  ;;  %v555_v42 = vpop.f32.mrb[38].mxu1 }
 0x124   :  { %v689_v39 = vsel %vm282_vm5, %v653_v35, 0.0  ;;  %v619_v40 = vsel %vm282_vm5, %v581_v36, 0.0  ;;  %v654_v41 = vmul.f32 %v581_v36, %v264_v30  ;;  %v910_v46 = vpop.f32.mrb[39].mxu1 }
 0x125   :  { %v690_v43 = vadd.f32 %v689_v39, %v688_v27  ;;  %v620_v44 = vadd.f32 %v619_v40, %v618_v37  ;;  %v268_v45 = vpop.f32.mrb[36].mxu0 }
 0x126   :  { %v691_v47 = vsel %vm282_vm5, %v654_v41, 0.0  ;;  %v269_v48 = vadd.f32 %v1188_v38, %v268_v45  ;;  %v843_v49 = vpop.f32.mrb[37].mxu0 }
 0x127   :  { %v692_v50 = vadd.f32 %v691_v47, %v690_v43  ;;  %v271_v51 = vpop.f32.mrb[38].mxu0  ;;  %v560_v55 = vpop.f32.mrb[40].mxu1 }
 0x128   :  { %301 = vst.msk [vmem:[%s1358_s5 + $0x90] sm:$0xff] %vm282_vm5, %v269_v48  ;;  %v582_v52 = vmul.f32 %v550_v32, %v269_v48  ;;  %v272_v53 = vadd.f32 %v1188_v38, %v271_v51  ;;  %v844_v54 = vpop.f32.mrb[39].mxu0  ;;  %v913_v56 = vpop.f32.mrb[41].mxu1 }
 0x12a   :  { %v621_v57 = vsel %vm282_vm5, %v582_v52, 0.0  ;;  %v655_v58 = vmul.f32 %v582_v52, %v269_v48  ;;  %302 = vst.msk [vmem:[%s1358_s5 + $0x98] sm:$0xff] %vm282_vm5, %v272_v53  ;;  %v583_v59 = vmul.f32 %v555_v42, %v272_v53 }
 0x12b   :  { %v622_v60 = vadd.f32 %v621_v57, %v620_v44 }
 0x12c   :  { %v693_v61 = vsel %vm282_vm5, %v655_v58, 0.0  ;;  %v623_v62 = vsel %vm282_vm5, %v583_v59, 0.0  ;;  %v656_v63 = vmul.f32 %v583_v59, %v272_v53 }
 0x12d   :  { %v694_v0 = vadd.f32 %v693_v61, %v692_v50  ;;  %v624_v1 = vadd.f32 %v623_v62, %v622_v60  ;;  %v276_v2 = vpop.f32.mrb[40].mxu0 }
 0x12e   :  { %v695_v3 = vsel %vm282_vm5, %v656_v63, 0.0  ;;  %v277_v4 = vadd.f32 %v1188_v38, %v276_v2  ;;  %v847_v5 = vpop.f32.mrb[41].mxu0 }
 0x12f   :  { %v696_v6 = vadd.f32 %v695_v3, %v694_v0  ;;  %v279_v7 = vpop.f32.mrb[42].mxu0 }
 0x130   :  { %303 = vst.msk [vmem:[%s1358_s5 + $0xa0] sm:$0xff] %vm282_vm5, %v277_v4  ;;  %v584_v8 = vmul.f32 %v560_v55, %v277_v4  ;;  %v848_v9 = vpop.f32.mrb[43].mxu0 }
 0x132   :  { %v625_v10 = vsel %vm282_vm5, %v584_v8, 0.0  ;;  %v657_v11 = vmul.f32 %v584_v8, %v277_v4 }
 0x133   :  { %v626_v12 = vadd.f32 %v625_v10, %v624_v1 }
 0x134   :  { %v697_v13 = vsel %vm282_vm5, %v657_v11, 0.0 }
 0x135   :  { %v627_v14 = vrot.slane %v626_v12, 4  ;;  %v698_v15 = vadd.f32 %v697_v13, %v696_v6 }
 0x137   :  { %v628_v16 = vadd.f32 %v627_v14, %v626_v12  ;;  %v699_v38 = vrot.slane %v698_v15, 4 }
 0x139   :  { %v629_v17 = vrot.slane %v628_v16, 2  ;;  %v700_v18 = vadd.f32 %v699_v38, %v698_v15 }
 0x13b   :  { %v630_v19 = vadd.f32 %v629_v17, %v628_v16  ;;  %v701_v20 = vrot.slane %v700_v18, 2 }
 0x13d   :  { %v631_v21 = vrot.slane %v630_v19, 1  ;;  %v702_v22 = vadd.f32 %v701_v20, %v700_v18 }
 0x13f   :  { %v632_v24 = vadd.f32 %v631_v21, %v630_v19  ;;  %v703_v25 = vrot.slane %v702_v22, 1 }
 0x141   :  { %v633_v27 = vadd.f32 %v632_v24, %v585_v23  ;;  %v704_v28 = vadd.f32 %v703_v25, %v702_v22 }
 0x143   :  { %635 = vst.msk [vmem:[%s1355_s6] sm:$0x1] %vm28_vm4, %v633_v27  ;;  %v705_v29 = vadd.f32 %v704_v28, %v636_v26 }
 0x145   :  { %706 = vst.msk [vmem:[%s1356_s7] sm:$0x1] %vm28_vm4, %v705_v29 }

</bundles_post_ra>
